<compile_context>
chip_gen: v6e
topology: v6e:2x2x1
jax: 0.10.0
libtpu: 0.0.40
codegen_flags: <defaults>
</compile_context>

<pallas_src>
import functools

import jax
import jax.numpy as jnp
from jax import lax
from jax.experimental import pallas as pl
from jax.experimental.pallas import tpu as pltpu


# --------------------------------------------------------------------------
# Pallas kernel: one lane-tile of pixels per grid step.
# --------------------------------------------------------------------------
def _cell_kernel(p_ref, w_ref, c_ref, ht_ref, ct_ref, *, Hc):
    """p_ref : (Kp, Tm)   bf16 im2col patches^T (x & h taps + bias row)
       w_ref : (4*Hc, Kp) bf16 fused conv weights (+ bias column)
       c_ref : (Hc, Tm)   f32 previous cell state, channel-major
       ht_ref: (Hc, Tm)   new hidden state
       ct_ref: (Hc, Tm)   new cell state
    """
    # Single MXU matmul does all k*k taps of i2h + h2h plus the bias.
    acc = jnp.dot(w_ref[...], p_ref[...], preferred_element_type=jnp.float32)

    # Gates are 8-aligned sublane slices of the (4*Hc, Tm) accumulator.
    it = jax.nn.sigmoid(acc[0 * Hc:1 * Hc, :])
    ft = jax.nn.sigmoid(acc[1 * Hc:2 * Hc, :])
    ot = jax.nn.sigmoid(acc[2 * Hc:3 * Hc, :])
    gt = jnp.tanh(acc[3 * Hc:4 * Hc, :])      # == 5th chunk of reference conv

    c_prev = c_ref[...].astype(jnp.float32)
    ct = ft * c_prev + it * gt
    ht = ot * jnp.tanh(ct)

    ht_ref[...] = ht.astype(ht_ref.dtype)
    ct_ref[...] = ct.astype(ct_ref.dtype)


# --------------------------------------------------------------------------
# Hardware-aware tiling helpers (robust fallbacks if introspection fails).
# --------------------------------------------------------------------------
def _tpu_vmem_bytes():
    try:
        return int(pltpu.get_tpu_info().vmem_capacity_bytes)
    except Exception:
        return 64 * 1024 * 1024  # conservative (v7x per-core physical VMEM)


def _tpu_num_tensorcores():
    try:
        info = pltpu.get_tpu_info()
        for name in ("num_cores", "cores_per_chip", "num_tensorcores",
                     "core_count"):
            v = getattr(info, name, None)
            if v:
                return int(v)
    except Exception:
        pass
    return 2  # safe default: the extra grid split costs ~0.35us on 1-TC chips


def _pick_tile_m(M_pad, Kp, Hc, num_cores, vmem_budget):
    """Largest lane-aligned pixel tile dividing M_pad that fits the VMEM
    budget; on multi-TC chips prefer >=num_cores blocks so the "parallel"
    grid axis is shared across TensorCores."""
    in_b, c_b, out_b = 2, 4, 4  # bf16 matmul operands, f32 state/outputs

    def pipe_bytes(tm):
        return (2 * Kp * tm * in_b            # patches (double-buffered)
                + 2 * 4 * Hc * Kp * in_b      # fused weights
                + 2 * Hc * tm * c_b           # c_prev
                + 2 * 2 * Hc * tm * out_b)    # ht, ct

    divs = [d for d in range(128, M_pad + 1, 128) if M_pad % d == 0]
    target_max = M_pad if num_cores <= 1 else max(128, M_pad // num_cores)
    best = 128
    for d in divs:
        if d <= target_max and pipe_bytes(d) <= vmem_budget and d > best:
            best = d
    return best


# --------------------------------------------------------------------------
# Timestep-invariant weight fusion (hoisted out of the per-call path).
# --------------------------------------------------------------------------
def prepare_fused_weights(wi, wh, bi, bh, k, compute_dtype=jnp.bfloat16):
    """Fold i2h/h2h conv taps + summed bias into one (4*Hc, Kp) matrix.
    The unused 4th gate chunk of the 5*Hc conv output is dropped.  Weights
    don't change across timesteps -> compute once and reuse."""
    Hc = wi.shape[0] // 5
    Cin = wi.shape[1]
    Kfeat = k * k * (Cin + Hc)
    Kp = ((Kfeat + 1 + 15) // 16) * 16  # +1 bias row, pad to sublane multiple
    f32 = jnp.float32

    wi_u = jnp.concatenate([wi[:3 * Hc], wi[4 * Hc:]], axis=0).astype(f32)
    wh_u = jnp.concatenate([wh[:3 * Hc], wh[4 * Hc:]], axis=0).astype(f32)
    b_sum = (bi + bh).astype(f32)
    b_u = jnp.concatenate([b_sum[:3 * Hc], b_sum[4 * Hc:]])

    cols = []
    for dy in range(k):
        for dx in range(k):
            cols.append(wi_u[:, :, dy, dx])                    # (4*Hc, Cin)
            cols.append(wh_u[:, :, dy, dx])                    # (4*Hc, Hc)
    cols.append(b_u[:, None])
    cols.append(jnp.zeros((4 * Hc, Kp - Kfeat - 1), f32))
    return jnp.concatenate(cols, axis=1).astype(compute_dtype)  # (4*Hc, Kp)


# --------------------------------------------------------------------------
# Forward wrapper (NCHW in / NCHW out, like the PyTorch module).
# --------------------------------------------------------------------------
def attentive_conv_lstm_cell(xt, h_prev, c_prev, wi, wh, bi, bh, k,
                             w_fused=None):
    """xt: (B,Cin,H,W)  h_prev,c_prev: (B,Hc,H,W)
       wi: (5*Hc,Cin,k,k)  wh: (5*Hc,Hc,k,k)  bi,bh: (5*Hc,)
       returns (output (B,1,Hc,H,W), (ht, ct))"""
    assert k % 2 == 1  # matches the PyTorch module; SAME padding only for odd k
    B, Cin, H, W = xt.shape
    Hc = h_prev.shape[1]
    p = (k - 1) // 2
    M = B * H * W
    Kfeat = k * k * (Cin + Hc)
    Kp = ((Kfeat + 1 + 15) // 16) * 16
    M_pad = ((M + 127) // 128) * 128
    cdt = jnp.bfloat16
    f32 = jnp.float32

    if w_fused is None:
        w_fused = prepare_fused_weights(wi, wh, bi, bh, k, cdt)

    # im2col built DIRECTLY channel-major (Kp, M): pixels land on the 128-lane
    # axis, no transpose of the k^2-expanded operand, operands cast to bf16.
    x_cm = jnp.pad(jnp.transpose(xt, (1, 0, 2, 3)).astype(cdt),
                   ((0, 0), (0, 0), (p, p), (p, p)))
    h_cm = jnp.pad(jnp.transpose(h_prev, (1, 0, 2, 3)).astype(cdt),
                   ((0, 0), (0, 0), (p, p), (p, p)))
    rows = []
    for dy in range(k):
        for dx in range(k):
            rows.append(x_cm[:, :, dy:dy + H, dx:dx + W].reshape(Cin, M))
            rows.append(h_cm[:, :, dy:dy + H, dx:dx + W].reshape(Hc, M))
    rows.append(jnp.ones((1, M), cdt))                   # bias row
    rows.append(jnp.zeros((Kp - Kfeat - 1, M), cdt))     # sublane pad
    patches_t = jnp.concatenate(rows, axis=0)            # (Kp, M)

    # Previous cell state channel-major (pixels on lanes), kept in f32.
    c_t = jnp.transpose(c_prev, (1, 0, 2, 3)).reshape(Hc, M).astype(f32)

    # Lane-pad the pixel axis so every store is an unmasked full-lane vst.
    if M_pad != M:
        patches_t = jnp.pad(patches_t, ((0, 0), (0, M_pad - M)))
        c_t = jnp.pad(c_t, ((0, 0), (0, M_pad - M)))

    vmem_cap = _tpu_vmem_bytes()
    n_cores = _tpu_num_tensorcores()
    Tm = _pick_tile_m(M_pad, Kp, Hc, n_cores, int(vmem_cap * 0.45))
    grid = (M_pad // Tm,)
    vmem_limit = int(max(32 * 1024 * 1024, min(vmem_cap * 0.75,
                                               96 * 1024 * 1024)))

    kernel = functools.partial(_cell_kernel, Hc=Hc)
    ht_t, ct_t = pl.pallas_call(
        kernel,
        out_shape=(
            jax.ShapeDtypeStruct((Hc, M_pad), f32),
            jax.ShapeDtypeStruct((Hc, M_pad), f32),
        ),
        grid_spec=pltpu.PrefetchScalarGridSpec(
            num_scalar_prefetch=0,
            grid=grid,
            in_specs=[
                pl.BlockSpec((Kp, Tm), lambda i: (0, i)),
                pl.BlockSpec((4 * Hc, Kp), lambda i: (0, 0)),
                pl.BlockSpec((Hc, Tm), lambda i: (0, i)),
            ],
            out_specs=(
                pl.BlockSpec((Hc, Tm), lambda i: (0, i)),
                pl.BlockSpec((Hc, Tm), lambda i: (0, i)),
            ),
        ),
        compiler_params=pltpu.CompilerParams(
            dimension_semantics=("parallel",),
            vmem_limit_bytes=vmem_limit),
    )(patches_t, w_fused, c_t)

    ht_t = ht_t[:, :M]
    ct_t = ct_t[:, :M]
    # NOTE: for a multi-step recurrence, keep (ht, ct) in this (Hc, M) layout
    # between steps and only transpose back to NCHW once at the end.
    ht = jnp.transpose(ht_t.reshape(Hc, B, H, W), (1, 0, 2, 3)).astype(xt.dtype)
    ct = jnp.transpose(ct_t.reshape(Hc, B, H, W), (1, 0, 2, 3)).astype(xt.dtype)
    output = ht[:, None]  # unsqueeze(1)
    return output, (ht, ct)


# --------------------------------------------------------------------------
# Pure-JAX reference mirroring the PyTorch module (NCHW), for verification.
# --------------------------------------------------------------------------
def _ref_forward(xt, h_prev, c_prev, wi, wh, bi, bh, Hc):
    def conv(x, w, b):
        y = lax.conv_general_dilated(
            x, w, window_strides=(1, 1), padding="SAME",
            dimension_numbers=("NCHW", "OIHW", "NCHW"))
        return y + b[None, :, None, None]

    sums = conv(xt, wi, bi) + conv(h_prev, wh, bh)
    it = jax.nn.sigmoid(sums[:, 0 * Hc:1 * Hc])
    ft = jax.nn.sigmoid(sums[:, 1 * Hc:2 * Hc])
    ot = jax.nn.sigmoid(sums[:, 2 * Hc:3 * Hc])
    gt = jnp.tanh(sums[:, 4 * Hc:5 * Hc])
    ct = ft * c_prev + it * gt
    ht = ot * jnp.tanh(ct)
    return ht[:, None], (ht, ct)


def _xavier_uniform(key, shape):
    O, I, kh, kw = shape
    fan_in, fan_out = I * kh * kw, O * kh * kw
    bound = (6.0 / (fan_in + fan_out)) ** 0.5
    return jax.random.uniform(key, shape, jnp.float32, -bound, bound)


if __name__ == "__main__":
    B, Cin, Hc, H, W, K = 2, 4, 32, 16, 16, 3

    key = jax.random.PRNGKey(0)
    k_wi, k_wh, k_x, k_h, k_c = jax.random.split(key, 5)

    wi = _xavier_uniform(k_wi, (5 * Hc, Cin, K, K))
    wh = _xavier_uniform(k_wh, (5 * Hc, Hc, K, K))
    bi = jnp.zeros((5 * Hc,), jnp.float32)
    bh = jnp.zeros((5 * Hc,), jnp.float32)

    xt = jax.random.normal(k_x, (B, Cin, H, W), jnp.float32)
    h0 = jax.random.normal(k_h, (B, Hc, H, W), jnp.float32)
    c0 = jax.random.normal(k_c, (B, Hc, H, W), jnp.float32)

    # Timestep-invariant weight fusion: done ONCE, reused across steps.
    w_fused = prepare_fused_weights(wi, wh, bi, bh, K)

    cell = jax.jit(attentive_conv_lstm_cell, static_argnames=("k",))
    output, (ht, ct) = cell(xt, h0, c0, wi, wh, bi, bh, k=K, w_fused=w_fused)
    jax.block_until_ready((output, ht, ct))

    # Verify against a pure-JAX reference of the PyTorch forward.
    out_r, (ht_r, ct_r) = _ref_forward(xt, h0, c0, wi, wh, bi, bh, Hc)
    assert output.shape == (B, 1, Hc, H, W)
    # bf16 matmul operands (f32 accumulation + f32 epilogue) -> ~1e-2 level
    # agreement with the full-f32 reference.
    assert jnp.allclose(ht, ht_r, rtol=2.5e-2, atol=2.5e-2)
    assert jnp.allclose(ct, ct_r, rtol=2.5e-2, atol=2.5e-2)
    assert jnp.allclose(output, out_r, rtol=2.5e-2, atol=2.5e-2)

    print("KERNEL_OK")
</pallas_src>

<mosaic_0001>
module attributes {stable_mosaic.version = 11 : i64} {
  func.func @_cell_kernel(%arg0: i32, %arg1: memref<336x256xbf16, #tpu.memory_space<vmem>>, %arg2: memref<128x336xbf16, #tpu.memory_space<vmem>>, %arg3: memref<32x256xf32, #tpu.memory_space<vmem>>, %arg4: memref<32x256xf32, #tpu.memory_space<vmem>>, %arg5: memref<32x256xf32, #tpu.memory_space<vmem>>) attributes {dimension_semantics = [#tpu.dimension_semantics<parallel>], iteration_bounds = array<i64: 2>, scalar_prefetch = 0 : i64, scratch_operands = 0 : i64, tpu.core_type = #tpu.core_type<tc>, window_params = [{transform_indices = @transform_0, window_bounds = array<i64: 336, 256>}, {pipeline_mode = #tpu.pipeline_mode<synchronous>, transform_indices = @transform_1, window_bounds = array<i64: 128, 336>}, {transform_indices = @transform_2, window_bounds = array<i64: 32, 256>}, {transform_indices = @transform_3, window_bounds = array<i64: 32, 256>}, {transform_indices = @transform_4, window_bounds = array<i64: 32, 256>}]} {
    %c0 = arith.constant 0 : index
    %c0_0 = arith.constant 0 : index
    %0 = vector.load %arg2[%c0, %c0_0] : memref<128x336xbf16, #tpu.memory_space<vmem>>, vector<128x336xbf16>
    %c0_1 = arith.constant 0 : index
    %c0_2 = arith.constant 0 : index
    %1 = vector.load %arg1[%c0_1, %c0_2] : memref<336x256xbf16, #tpu.memory_space<vmem>>, vector<336x256xbf16>
    %cst = arith.constant dense<0.000000e+00> : vector<128x256xf32>
    %2 = tpu.matmul %0, %1, %cst {dimension_numbers = #tpu.dot_dimension_numbers<[1], [0], [0], [1], [0, 0, 1, 1], [], []>} : vector<128x336xbf16>, vector<336x256xbf16>, vector<128x256xf32> -> vector<128x256xf32>
    %3 = vector.extract_strided_slice %2 {offsets = [0, 0], sizes = [32, 256], strides = [1, 1]} : vector<128x256xf32> to vector<32x256xf32>
    %4 = arith.negf %3 : vector<32x256xf32>
    %5 = math.exp %4 : vector<32x256xf32>
    %cst_3 = arith.constant 1.000000e+00 : f32
    %6 = vector.broadcast %cst_3 : f32 to vector<32x256xf32>
    %7 = arith.addf %6, %5 : vector<32x256xf32>
    %8 = arith.divf %6, %7 : vector<32x256xf32>
    %9 = vector.extract_strided_slice %2 {offsets = [32, 0], sizes = [32, 256], strides = [1, 1]} : vector<128x256xf32> to vector<32x256xf32>
    %10 = arith.negf %9 : vector<32x256xf32>
    %11 = math.exp %10 : vector<32x256xf32>
    %cst_4 = arith.constant 1.000000e+00 : f32
    %12 = vector.broadcast %cst_4 : f32 to vector<32x256xf32>
    %13 = arith.addf %12, %11 : vector<32x256xf32>
    %14 = arith.divf %12, %13 : vector<32x256xf32>
    %15 = vector.extract_strided_slice %2 {offsets = [64, 0], sizes = [32, 256], strides = [1, 1]} : vector<128x256xf32> to vector<32x256xf32>
    %16 = arith.negf %15 : vector<32x256xf32>
    %17 = math.exp %16 : vector<32x256xf32>
    %cst_5 = arith.constant 1.000000e+00 : f32
    %18 = vector.broadcast %cst_5 : f32 to vector<32x256xf32>
    %19 = arith.addf %18, %17 : vector<32x256xf32>
    %20 = arith.divf %18, %19 : vector<32x256xf32>
    %21 = vector.extract_strided_slice %2 {offsets = [96, 0], sizes = [32, 256], strides = [1, 1]} : vector<128x256xf32> to vector<32x256xf32>
    %22 = math.tanh %21 : vector<32x256xf32>
    %c0_6 = arith.constant 0 : index
    %c0_7 = arith.constant 0 : index
    %23 = vector.load %arg3[%c0_6, %c0_7] : memref<32x256xf32, #tpu.memory_space<vmem>>, vector<32x256xf32>
    %24 = arith.mulf %14, %23 : vector<32x256xf32>
    %25 = arith.mulf %8, %22 : vector<32x256xf32>
    %26 = arith.addf %24, %25 : vector<32x256xf32>
    %27 = math.tanh %26 : vector<32x256xf32>
    %28 = arith.mulf %20, %27 : vector<32x256xf32>
    %c0_8 = arith.constant 0 : index
    %c0_9 = arith.constant 0 : index
    %29 = vector.load %arg4[%c0_8, %c0_9] : memref<32x256xf32, #tpu.memory_space<vmem>>, vector<32x256xf32>
    tpu.vector_store %arg4[%c0_8, %c0_9], %28 {strides = array<i32>} : memref<32x256xf32, #tpu.memory_space<vmem>>, vector<32x256xf32>,
    %c0_10 = arith.constant 0 : index
    %c0_11 = arith.constant 0 : index
    %30 = vector.load %arg5[%c0_10, %c0_11] : memref<32x256xf32, #tpu.memory_space<vmem>>, vector<32x256xf32>
    tpu.vector_store %arg5[%c0_10, %c0_11], %26 {strides = array<i32>} : memref<32x256xf32, #tpu.memory_space<vmem>>, vector<32x256xf32>,
    return
  }
  func.func @transform_0(%arg0: i32) -> (i32, i32) {
    %c0_i32 = arith.constant 0 : i32
    %c0_i32_0 = arith.constant 0 : i32
    return %c0_i32, %arg0 : i32, i32
  }
  func.func @transform_1(%arg0: i32) -> (i32, i32) {
    %c0_i32 = arith.constant 0 : i32
    %c0_i32_0 = arith.constant 0 : i32
    %c0_i32_1 = arith.constant 0 : i32
    return %c0_i32, %c0_i32_0 : i32, i32
  }
  func.func @transform_2(%arg0: i32) -> (i32, i32) {
    %c0_i32 = arith.constant 0 : i32
    %c0_i32_0 = arith.constant 0 : i32
    return %c0_i32, %arg0 : i32, i32
  }
  func.func @transform_3(%arg0: i32) -> (i32, i32) {
    %c0_i32 = arith.constant 0 : i32
    %c0_i32_0 = arith.constant 0 : i32
    return %c0_i32, %arg0 : i32, i32
  }
  func.func @transform_4(%arg0: i32) -> (i32, i32) {
    %c0_i32 = arith.constant 0 : i32
    %c0_i32_0 = arith.constant 0 : i32
    return %c0_i32, %arg0 : i32, i32
  }
}

</mosaic_0001>

<bundles_post_ra>
// kernel: attentive_conv_lstm_cell.1
= control target key start
LH: loop header
LB: loop body
LE: loop exit
PB: predicated region body
PF: predicated region fallthrough
CT: control target
= control target key end

     0   :  { %s1936_s15 = smov 0   ;;  %s1938_s16 = smov 0   ;;  %s2347_s0 = inlined_call_operand.vmem [shape: bf16[336,512], index: 0, kind: input, shape index: {}]   ;;  %s2348_s1 = inlined_call_operand.vmem [shape: bf16[128,336], index: 1, kind: input, shape index: {}]   ;;  %s2349_s2 = inlined_call_operand.vmem [shape: f32[32,512], index: 2, kind: input, shape index: {}]   ;;  %s2350_s3 = inlined_call_operand.vmem [shape: f32[32,512], index: 3, kind: output, shape index: {0}]   ;;  %s2351_s4 = inlined_call_operand.vmem [shape: f32[32,512], index: 4, kind: output, shape index: {1}]  }
   0x1   :  { %s1940_s17 = smov 0  }
   0x2 LB: > { %s1952_s18 = sadd.s32 4294967295, %s1908_s17   ;;  %s1955_s19 = sadd.s32 1, %s1908_s17   ;;  %s1908_s17 = sphi %s1940_s17, %s2356_s17   ;;  %s1904_s16 = sphi %s1938_s16, %s2355_s16   ;;  %s1900_s15 = sphi %s1936_s15, %s2354_s15  }
   0x3   : > { %s19_s20 = ssub.s32 %s1908_s17, %s1955_s19  ;;  %s22_s21 = sadd.s32 1, %s1904_s16 }
   0x4   : > { %p20_p0 = scmp.eq.s32.totalorder %s19_s20, 0  ;;  %p29_p1 = scmp.ne.s32.totalorder %s1904_s16, %s1900_s15 }
   0x5   : > { %p30_p2 = scmp.eq.s32.totalorder %s1908_s17, 0  ;;  %p106_p3 = scmp.eq.s32.totalorder %s1952_s18, 1 }
   0x6   : > { %s1965_s22 = scalar_select %p20_p0, %s1904_s16, %s22_s21  }
   0x7   : > { %p1967_p4 = por %p30_p2, %p29_p1  ;;  %p1971_p5 = por %p106_p3, %p29_p1 }
   0x8   : > { %p1516_p6 = scmp.ge.s32.totalorder %s1908_s17, 2 }
   0xa   : > { %157 = sbr.rel (%p1516_p6) target bundleno = 48 (0x30), region = 20 }
   0xf   : > { %160 = sbr.rel (!%p1967_p4) target bundleno = 40 (0x28), region = 24  ;;  %s162_s25 = sand.u32 (%p1967_p4), 1, %s1904_s16  }
  0x10   : > { %s1632_s26 = sshll.u32 (%p1967_p4), %s1908_s17, 3  ;;  %s1636_s27 = smul.u32 (%p1967_p4), 336, %s162_s25 }
  0x11   : > { %s1983_s30 = scalar_lea.vmem (%p1967_p4), %s2347_s0, %s1632_s26 }
  0x12   : > { %v278_v0 = vld [vmem:[%s1983_s30] sm:$0xff] (%p1967_p4)  ;;  %v280_v1 = vld [vmem:[%s1983_s30 + $0x10] sm:$0xff] (%p1967_p4)  ;;  %s1991_s5 = scalar_lea.vmem (%p1967_p4), [#allocation2], %s1636_s27 }
  0x13   : > { %v282_v2 = vld [vmem:[%s1983_s30 + $0x20] sm:$0xff] (%p1967_p4)  ;;  %v284_v3 = vld [vmem:[%s1983_s30 + $0x30] sm:$0xff] (%p1967_p4)  ;;  %279 = vst [vmem:[%s1991_s5] sm:$0xff] (%p1967_p4), %v278_v0  ;;  %281 = vst [vmem:[%s1991_s5 + $0x8] sm:$0xff] (%p1967_p4), %v280_v1 }
  0x14   : > { %v286_v4 = vld [vmem:[%s1983_s30 + $0x40] sm:$0xff]  ;;  %v288_v5 = vld [vmem:[%s1983_s30 + $0x50] sm:$0xff]  ;;  %283 = vst [vmem:[%s1991_s5 + $0x10] sm:$0xff] %v282_v2  ;;  %285 = vst [vmem:[%s1991_s5 + $0x18] sm:$0xff] %v284_v3 }
  0x15   : > { %287 = vst [vmem:[%s1991_s5 + $0x20] sm:$0xff] %v286_v4  ;;  %289 = vst [vmem:[%s1991_s5 + $0x28] sm:$0xff] %v288_v5  ;;  %v290_v6 = vld [vmem:[%s1983_s30 + $0x60] sm:$0xff]  ;;  %v292_v7 = vld [vmem:[%s1983_s30 + $0x70] sm:$0xff] }
  0x16   : > { %v294_v8 = vld [vmem:[%s1983_s30 + $0x80] sm:$0xff]  ;;  %291 = vst [vmem:[%s1991_s5 + $0x30] sm:$0xff] %v290_v6  ;;  %293 = vst [vmem:[%s1991_s5 + $0x38] sm:$0xff] %v292_v7  ;;  %v296_v9 = vld [vmem:[%s1983_s30 + $0x90] sm:$0xff] }
  0x17   : > { %295 = vst [vmem:[%s1991_s5 + $0x40] sm:$0xff] %v294_v8  ;;  %v298_v10 = vld [vmem:[%s1983_s30 + $0xa0] sm:$0xff]  ;;  %v300_v11 = vld [vmem:[%s1983_s30 + $0xb0] sm:$0xff]  ;;  %297 = vst [vmem:[%s1991_s5 + $0x48] sm:$0xff] %v296_v9 }
  0x18   : > { %299 = vst [vmem:[%s1991_s5 + $0x50] sm:$0xff] %v298_v10  ;;  %301 = vst [vmem:[%s1991_s5 + $0x58] sm:$0xff] %v300_v11  ;;  %v302_v12 = vld [vmem:[%s1983_s30 + $0xc0] sm:$0xff]  ;;  %v304_v13 = vld [vmem:[%s1983_s30 + $0xd0] sm:$0xff] }
  0x19   : > { %v306_v14 = vld [vmem:[%s1983_s30 + $0xe0] sm:$0xff]  ;;  %303 = vst [vmem:[%s1991_s5 + $0x60] sm:$0xff] %v302_v12  ;;  %305 = vst [vmem:[%s1991_s5 + $0x68] sm:$0xff] %v304_v13  ;;  %v308_v15 = vld [vmem:[%s1983_s30 + $0xf0] sm:$0xff] }
  0x1a   : > { %307 = vst [vmem:[%s1991_s5 + $0x70] sm:$0xff] %v306_v14  ;;  %v310_v16 = vld [vmem:[%s1983_s30 + $0x100] sm:$0xff]  ;;  %v312_v17 = vld [vmem:[%s1983_s30 + $0x110] sm:$0xff]  ;;  %309 = vst [vmem:[%s1991_s5 + $0x78] sm:$0xff] %v308_v15 }
  0x1b   : > { %311 = vst [vmem:[%s1991_s5 + $0x80] sm:$0xff] %v310_v16  ;;  %313 = vst [vmem:[%s1991_s5 + $0x88] sm:$0xff] %v312_v17  ;;  %v314_v18 = vld [vmem:[%s1983_s30 + $0x120] sm:$0xff]  ;;  %v316_v19 = vld [vmem:[%s1983_s30 + $0x130] sm:$0xff] }
  0x1c   : > { %v318_v20 = vld [vmem:[%s1983_s30 + $0x140] sm:$0xff]  ;;  %315 = vst [vmem:[%s1991_s5 + $0x90] sm:$0xff] %v314_v18  ;;  %317 = vst [vmem:[%s1991_s5 + $0x98] sm:$0xff] %v316_v19  ;;  %v320_v21 = vld [vmem:[%s1983_s30 + $0x150] sm:$0xff] }
  0x1d   : > { %319 = vst [vmem:[%s1991_s5 + $0xa0] sm:$0xff] %v318_v20  ;;  %v322_v22 = vld [vmem:[%s1983_s30 + $0x160] sm:$0xff]  ;;  %v324_v23 = vld [vmem:[%s1983_s30 + $0x170] sm:$0xff]  ;;  %321 = vst [vmem:[%s1991_s5 + $0xa8] sm:$0xff] %v320_v21 }
  0x1e   : > { %323 = vst [vmem:[%s1991_s5 + $0xb0] sm:$0xff] %v322_v22  ;;  %325 = vst [vmem:[%s1991_s5 + $0xb8] sm:$0xff] %v324_v23  ;;  %v326_v24 = vld [vmem:[%s1983_s30 + $0x180] sm:$0xff]  ;;  %v328_v25 = vld [vmem:[%s1983_s30 + $0x190] sm:$0xff] }
  0x1f   : > { %v330_v26 = vld [vmem:[%s1983_s30 + $0x1a0] sm:$0xff]  ;;  %327 = vst [vmem:[%s1991_s5 + $0xc0] sm:$0xff] %v326_v24  ;;  %329 = vst [vmem:[%s1991_s5 + $0xc8] sm:$0xff] %v328_v25  ;;  %v332_v27 = vld [vmem:[%s1983_s30 + $0x1b0] sm:$0xff] }
  0x20   : > { %331 = vst [vmem:[%s1991_s5 + $0xd0] sm:$0xff] %v330_v26  ;;  %v334_v28 = vld [vmem:[%s1983_s30 + $0x1c0] sm:$0xff]  ;;  %v336_v29 = vld [vmem:[%s1983_s30 + $0x1d0] sm:$0xff]  ;;  %333 = vst [vmem:[%s1991_s5 + $0xd8] sm:$0xff] %v332_v27 }
  0x21   : > { %335 = vst [vmem:[%s1991_s5 + $0xe0] sm:$0xff] %v334_v28  ;;  %337 = vst [vmem:[%s1991_s5 + $0xe8] sm:$0xff] %v336_v29  ;;  %v338_v30 = vld [vmem:[%s1983_s30 + $0x1e0] sm:$0xff]  ;;  %v340_v31 = vld [vmem:[%s1983_s30 + $0x1f0] sm:$0xff] }
  0x22   : > { %v342_v32 = vld [vmem:[%s1983_s30 + $0x200] sm:$0xff]  ;;  %339 = vst [vmem:[%s1991_s5 + $0xf0] sm:$0xff] %v338_v30  ;;  %341 = vst [vmem:[%s1991_s5 + $0xf8] sm:$0xff] %v340_v31  ;;  %v344_v33 = vld [vmem:[%s1983_s30 + $0x210] sm:$0xff] }
  0x23   : > { %343 = vst [vmem:[%s1991_s5 + $0x100] sm:$0xff] %v342_v32  ;;  %v346_v34 = vld [vmem:[%s1983_s30 + $0x220] sm:$0xff]  ;;  %v348_v35 = vld [vmem:[%s1983_s30 + $0x230] sm:$0xff]  ;;  %345 = vst [vmem:[%s1991_s5 + $0x108] sm:$0xff] %v344_v33 }
  0x24   : > { %347 = vst [vmem:[%s1991_s5 + $0x110] sm:$0xff] %v346_v34  ;;  %349 = vst [vmem:[%s1991_s5 + $0x118] sm:$0xff] %v348_v35  ;;  %v350_v36 = vld [vmem:[%s1983_s30 + $0x240] sm:$0xff]  ;;  %v352_v37 = vld [vmem:[%s1983_s30 + $0x250] sm:$0xff] }
  0x25   : > { %v354_v38 = vld [vmem:[%s1983_s30 + $0x260] sm:$0xff]  ;;  %351 = vst [vmem:[%s1991_s5 + $0x120] sm:$0xff] %v350_v36  ;;  %353 = vst [vmem:[%s1991_s5 + $0x128] sm:$0xff] %v352_v37  ;;  %v356_v39 = vld [vmem:[%s1983_s30 + $0x270] sm:$0xff] }
  0x26   : > { %355 = vst [vmem:[%s1991_s5 + $0x130] sm:$0xff] %v354_v38  ;;  %v358_v40 = vld [vmem:[%s1983_s30 + $0x280] sm:$0xff]  ;;  %v360_v41 = vld [vmem:[%s1983_s30 + $0x290] sm:$0xff]  ;;  %357 = vst [vmem:[%s1991_s5 + $0x138] sm:$0xff] %v356_v39 }
  0x27   : > { %359 = vst [vmem:[%s1991_s5 + $0x140] sm:$0xff] %v358_v40  ;;  %361 = vst [vmem:[%s1991_s5 + $0x148] sm:$0xff] %v360_v41 }
  0x28 PF: > { %367 = sbr.rel (!%p1967_p4) target bundleno = 48 (0x30), region = 62  ;;  %s369_s6 = sand.u32 (%p1967_p4), 1, %s1904_s16  }
  0x29   : > { %s1633_s7 = sshll.u32 (%p1967_p4), %s1908_s17, 4  ;;  %s1519_s8 = sshll.u32 (%p1967_p4), %s369_s6, 6 }
  0x2a   : > { %s374_s11 = scalar_lea.vmem (%p1967_p4), %s2349_s2, %s1633_s7  ;;  %s371_s12 = scalar_lea.vmem (%p1967_p4), [#allocation3], %s1519_s8 }
  0x2b   : > { %v387_v42 = vld [vmem:[%s374_s11] sm:$0xff] (%p1967_p4)  ;;  %v389_v43 = vld [vmem:[%s374_s11 + $0x8] sm:$0xff] (%p1967_p4) }
  0x2c   : > { %v391_v44 = vld [vmem:[%s374_s11 + $0x20] sm:$0xff] (%p1967_p4)  ;;  %388 = vst [vmem:[%s371_s12] sm:$0xff] (%p1967_p4), %v387_v42  ;;  %390 = vst [vmem:[%s371_s12 + $0x8] sm:$0xff] (%p1967_p4), %v389_v43  ;;  %v393_v45 = vld [vmem:[%s374_s11 + $0x28] sm:$0xff] (%p1967_p4) }
  0x2d   : > { %392 = vst [vmem:[%s371_s12 + $0x10] sm:$0xff] %v391_v44  ;;  %v395_v46 = vld [vmem:[%s374_s11 + $0x40] sm:$0xff]  ;;  %v397_v47 = vld [vmem:[%s374_s11 + $0x48] sm:$0xff]  ;;  %394 = vst [vmem:[%s371_s12 + $0x18] sm:$0xff] %v393_v45 }
  0x2e   : > { %396 = vst [vmem:[%s371_s12 + $0x20] sm:$0xff] %v395_v46  ;;  %398 = vst [vmem:[%s371_s12 + $0x28] sm:$0xff] %v397_v47  ;;  %v399_v48 = vld [vmem:[%s374_s11 + $0x60] sm:$0xff]  ;;  %v401_v49 = vld [vmem:[%s374_s11 + $0x68] sm:$0xff] }
  0x2f   : > { %400 = vst [vmem:[%s371_s12 + $0x30] sm:$0xff] %v399_v48  ;;  %402 = vst [vmem:[%s371_s12 + $0x38] sm:$0xff] %v401_v49 }
  0x30 PF: > { %p1522_p7 = scmp.ge.s32.totalorder %s1908_s17, 1  ;;  %p407_p8 = scmp.lt.s32.totalorder %s1908_s17, 3 }
  0x32   : > { %p408_p9 = pnand %p1522_p7, %p407_p8 }
  0x33   : > { %s414_s13 = sand.u32 (!%p408_p9), 1, %s1900_s15  }
  0x34   : > { %411 = sbr.rel (%p408_p9) target bundleno = 429 (0x1ad), region = 85  ;;  %s2266_s6 = sshll.u32 (!%p408_p9), %s414_s13, 6 }
  0x35   : > { %s1637_s14 = smul.u32 (!%p408_p9), 336, %s414_s13  ;;  %s2270_s15 = scalar_lea.vmem (!%p408_p9), [#allocation3], %s2266_s6 }
  0x36   : > { %s2279_s13 = scalar_lea.vmem (!%p408_p9), [#allocation5], %s2266_s6  ;;  %s2299_s7 = scalar_lea.vmem (!%p408_p9), [#allocation4], %s2266_s6 }
  0x37   : > { %s2087_s23 = scalar_lea.vmem (!%p408_p9), [#allocation2], %s1637_s14 }
  0x39   : > { %v1910_v50 = vmov 0   ;;  %v1729_v51 = vld [vmem:[%s2348_s1 + $0x4] ss:$12 sps:$4 sm:$0xff]   ;;  %v1723_v15 = vld [vmem:[%s2348_s1 + $0x8] ss:$12 sps:$4 sm:$0xff]   ;;  %vm862_vm0 = vcmask 654336  }
  0x3a   : > { %1032 = vmatprep.mubr.bf16.mxu1 %v1910_v50  ;;  %v1663_v52 = vld [vmem:[%s2087_s23 + $0x74] ss:$8 sps:$4 sm:$0xff]   ;;  %919 = vmatprep.mubr.bf16.mxu0 %v1729_v51  ;;  %v1665_v53 = vld [vmem:[%s2087_s23 + $0x70] ss:$8 sps:$4 sm:$0xff]   ;;  %v1666_v54 = vld [vmem:[%s2087_s23 + $0x64] ss:$8 sps:$4 sm:$0xff]  }
  0x3b   : > { %887 = vmatprep.subr.bf16.mxu0 %v1663_v52  ;;  %v1668_v55 = vld [vmem:[%s2087_s23 + $0x60] ss:$8 sps:$4 sm:$0xff]   ;;  %v1669_v56 = vld [vmem:[%s2087_s23 + $0x54] ss:$8 sps:$4 sm:$0xff]   ;;  %v1671_v57 = vld [vmem:[%s2087_s23 + $0x50] ss:$8 sps:$4 sm:$0xff]  }
  0x3c   : > { %888 = vmatpush1.bf16.msra.mxu0 %v1665_v53  ;;  %v1672_v58 = vld [vmem:[%s2087_s23 + $0x44] ss:$8 sps:$4 sm:$0xff]   ;;  %v1674_v59 = vld [vmem:[%s2087_s23 + $0x40] ss:$8 sps:$4 sm:$0xff]   ;;  %v1675_v60 = vld [vmem:[%s2087_s23 + $0x34] ss:$8 sps:$4 sm:$0xff]  }
  0x3d   : > { %889 = vmatprep.subr.bf16.mxu0 %v1666_v54  ;;  %v1693_v61 = vld [vmem:[%s2087_s23 + $0x144] ss:$8 sps:$4 sm:$0xff]   ;;  %v1695_v62 = vld [vmem:[%s2087_s23 + $0x140] ss:$8 sps:$4 sm:$0xff]   ;;  %v1677_v63 = vld [vmem:[%s2087_s23 + $0x30] ss:$8 sps:$4 sm:$0xff]  }
  0x3e   : > { %v1678_v0 = vld [vmem:[%s2087_s23 + $0x24] ss:$8 sps:$4 sm:$0xff]   ;;  %1006 = vmatprep.subr.bf16.mxu1 %v1693_v61  ;;  %v1699_v1 = vld [vmem:[%s2087_s23 + $0x134] ss:$8 sps:$4 sm:$0xff]   ;;  %v1701_v2 = vld [vmem:[%s2087_s23 + $0x130] ss:$8 sps:$4 sm:$0xff]  }
  0x3f   : > { %1007 = vmatpush1.bf16.msra.mxu1 %v1695_v62  ;;  %v1680_v3 = vld [vmem:[%s2087_s23 + $0x20] ss:$8 sps:$4 sm:$0xff]   ;;  %v1705_v4 = vld [vmem:[%s2087_s23 + $0x124] ss:$8 sps:$4 sm:$0xff]   ;;  %v1681_v5 = vld [vmem:[%s2087_s23 + $0x14] ss:$8 sps:$4 sm:$0xff]  }
  0x40   : > { %890 = vmatpush1.bf16.msra.mxu0 %v1668_v55  ;;  %1008 = vmatprep.subr.bf16.mxu1 %v1699_v1  ;;  %v1707_v6 = vld [vmem:[%s2087_s23 + $0x120] ss:$8 sps:$4 sm:$0xff]   ;;  %v1711_v7 = vld [vmem:[%s2087_s23 + $0x114] ss:$8 sps:$4 sm:$0xff]   ;;  %v1683_v8 = vld [vmem:[%s2087_s23 + $0x10] ss:$8 sps:$4 sm:$0xff]  }
  0x41   : > { %891 = vmatprep.subr.bf16.mxu0 %v1669_v56  ;;  %v1684_v9 = vld [vmem:[%s2087_s23 + $0x4] ss:$8 sps:$4 sm:$0xff]   ;;  %v1713_v10 = vld [vmem:[%s2087_s23 + $0x110] ss:$8 sps:$4 sm:$0xff]   ;;  %v1686_v12 = vld [vmem:[%s2087_s23] ss:$8 sps:$4 sm:$0xff]  }
  0x42   : > { %v1717_v11 = vld [vmem:[%s2087_s23 + $0x104] ss:$8 sps:$4 sm:$0xff]   ;;  %v1687_v13 = vld [vmem:[%s2087_s23 + $0xf4] ss:$8 sps:$4 sm:$0xff]   ;;  %v1719_v14 = vld [vmem:[%s2087_s23 + $0x100] ss:$8 sps:$4 sm:$0xff]  }
  0x43   : > { %1009 = vmatpush1.bf16.msra.mxu1 %v1701_v2  ;;  %v1689_v16 = vld [vmem:[%s2087_s23 + $0xf0] ss:$8 sps:$4 sm:$0xff]   ;;  %v1690_v17 = vld [vmem:[%s2087_s23 + $0xe4] ss:$8 sps:$4 sm:$0xff]   ;;  %v1692_v18 = vld [vmem:[%s2087_s23 + $0xe0] ss:$8 sps:$4 sm:$0xff]  }
  0x44   : > { %892 = vmatpush1.bf16.msra.mxu0 %v1671_v57  ;;  %1010 = vmatprep.subr.bf16.mxu1 %v1705_v4  ;;  %v1696_v19 = vld [vmem:[%s2087_s23 + $0xd4] ss:$8 sps:$4 sm:$0xff]   ;;  %v1698_v20 = vld [vmem:[%s2087_s23 + $0xd0] ss:$8 sps:$4 sm:$0xff]   ;;  %v1702_v21 = vld [vmem:[%s2087_s23 + $0xc4] ss:$8 sps:$4 sm:$0xff]  }
  0x45   : > { %893 = vmatprep.subr.bf16.mxu0 %v1672_v58  ;;  %v1730_v22 = vld [vmem:[%s2348_s1 + $0x20] ss:$12 sps:$4 sm:$0xff]   ;;  %v1734_v27 = vld [vmem:[%s2348_s1 + $0x38] ss:$12 sps:$4 sm:$0xff]   ;;  %v1738_v32 = vld [vmem:[%s2348_s1 + $0x50] ss:$12 sps:$4 sm:$0xff]  }
  0x46   : > { %v1704_v23 = vld [vmem:[%s2087_s23 + $0xc0] ss:$8 sps:$4 sm:$0xff]   ;;  %v1708_v24 = vld [vmem:[%s2087_s23 + $0xb4] ss:$8 sps:$4 sm:$0xff]   ;;  %v1710_v25 = vld [vmem:[%s2087_s23 + $0xb0] ss:$8 sps:$4 sm:$0xff]  }
  0x47   : > { %1011 = vmatpush1.bf16.msra.mxu1 %v1707_v6  ;;  %v1714_v26 = vld [vmem:[%s2087_s23 + $0xa4] ss:$8 sps:$4 sm:$0xff]   ;;  %v1716_v28 = vld [vmem:[%s2087_s23 + $0xa0] ss:$8 sps:$4 sm:$0xff]   ;;  %v1720_v29 = vld [vmem:[%s2087_s23 + $0x94] ss:$8 sps:$4 sm:$0xff]  }
  0x48   : > { %894 = vmatpush1.bf16.msra.mxu0 %v1674_v59  ;;  %1012 = vmatprep.subr.bf16.mxu1 %v1711_v7  ;;  %v1722_v30 = vld [vmem:[%s2087_s23 + $0x90] ss:$8 sps:$4 sm:$0xff]   ;;  %v1724_v31 = vld [vmem:[%s2087_s23 + $0x84] ss:$8 sps:$4 sm:$0xff]   ;;  %v1726_v33 = vld [vmem:[%s2087_s23 + $0x80] ss:$8 sps:$4 sm:$0xff]  }
  0x49   : > { %895 = vmatprep.subr.bf16.mxu0 %v1675_v60  ;;  %v1727_v34 = vld [vmem:[%s2348_s1] ss:$12 sps:$4 sm:$0xff]   ;;  %v1731_v35 = vld [vmem:[%s2348_s1 + $0x1c] ss:$12 sps:$4 sm:$0xff]   ;;  %v1733_v37 = vld [vmem:[%s2348_s1 + $0x18] ss:$12 sps:$4 sm:$0xff]  }
  0x4a   : > { %v1742_v36 = vld [vmem:[%s2348_s1 + $0x68] ss:$12 sps:$4 sm:$0xff]   ;;  %v1746_v39 = vld [vmem:[%s2348_s1 + $0x80] ss:$12 sps:$4 sm:$0xff]   ;;  %v1737_v40 = vld [vmem:[%s2348_s1 + $0x30] ss:$12 sps:$4 sm:$0xff]  }
  0x4b   : > { %1013 = vmatpush1.bf16.msra.mxu1 %v1713_v10  ;;  %v1735_v38 = vld [vmem:[%s2348_s1 + $0x34] ss:$12 sps:$4 sm:$0xff]   ;;  %v1739_v41 = vld [vmem:[%s2348_s1 + $0x4c] ss:$12 sps:$4 sm:$0xff]   ;;  %v1743_v44 = vld [vmem:[%s2348_s1 + $0x64] ss:$12 sps:$4 sm:$0xff]  }
  0x4c   : > { %896 = vmatpush1.bf16.msra.mxu0 %v1677_v63  ;;  %1014 = vmatprep.subr.bf16.mxu1 %v1717_v11  ;;  %v1750_v42 = vld [vmem:[%s2348_s1 + $0x98] ss:$12 sps:$4 sm:$0xff]   ;;  %v1741_v43 = vld [vmem:[%s2348_s1 + $0x48] ss:$12 sps:$4 sm:$0xff]   ;;  %v1754_v45 = vld [vmem:[%s2348_s1 + $0xb0] ss:$12 sps:$4 sm:$0xff]  }
  0x4d   : > { %897 = vmatprep.subr.bf16.mxu0 %v1678_v0  ;;  %v1745_v46 = vld [vmem:[%s2348_s1 + $0x60] ss:$12 sps:$4 sm:$0xff]   ;;  %v1747_v47 = vld [vmem:[%s2348_s1 + $0x7c] ss:$12 sps:$4 sm:$0xff]   ;;  %v1749_v48 = vld [vmem:[%s2348_s1 + $0x78] ss:$12 sps:$4 sm:$0xff]  }
  0x4e   : > { %v1751_v49 = vld [vmem:[%s2348_s1 + $0x94] ss:$12 sps:$4 sm:$0xff]   ;;  %v1755_v51 = vld [vmem:[%s2348_s1 + $0xac] ss:$12 sps:$4 sm:$0xff]   ;;  %s1634_s8 = sshll.u32 (%p1971_p5), %s1952_s18, 4 }
  0x4f   : > { %1015 = vmatpush1.bf16.msra.mxu1 %v1719_v14  ;;  %v1757_v52 = vld [vmem:[%s2348_s1 + $0xa8] ss:$12 sps:$4 sm:$0xff]   ;;  %s1342_s11 = scalar_lea.vmem (%p1971_p5), %s2350_s3, %s1634_s8 }
  0x50   : > { %898 = vmatpush1.bf16.msra.mxu0 %v1680_v3 }
  0x51   : > { %899 = vmatprep.subr.bf16.mxu0 %v1681_v5 }
  0x52   : > { %1592 = vmatmul.mubr.msk.bf16.vlgmr.msra.gmra.mxu1 %vm862_vm0, %v1723_v15 }
  0x53   : > { %1042 = vmatprep.mubr.bf16.mxu1 %v1910_v50 }
  0x54   : > { %900 = vmatpush1.bf16.msra.mxu0 %v1683_v8 }
  0x55   : > { %901 = vmatprep.subr.bf16.mxu0 %v1684_v9 }
  0x58   : > { %902 = vmatpush1.bf16.msra.mxu0 %v1686_v12 }
  0x59   : > { %903 = vmatprep.subr.bf16.mxu0 %v1687_v13 }
  0x5a   : > { %1593 = vmatmul.mubr.msk.bf16.gmra.mxu1 %vm862_vm0, %v1730_v22 }
  0x5b   : > { %1052 = vmatprep.mubr.bf16.mxu1 %v1910_v50 }
  0x5c   : > { %904 = vmatpush2.bf16.msra.mxu0 %v1689_v16 }
  0x5d   : > { %905 = vmatprep.subr.bf16.mxu0 %v1690_v17 }
  0x60   : > { %906 = vmatpush2.bf16.msra.mxu0 %v1692_v18 }
  0x61   : > { %907 = vmatprep.subr.bf16.mxu0 %v1696_v19 }
  0x62   : > { %1594 = vmatmul.mubr.msk.bf16.gmra.mxu1 %vm862_vm0, %v1734_v27 }
  0x63   : > { %1062 = vmatprep.mubr.bf16.mxu1 %v1910_v50 }
  0x64   : > { %908 = vmatpush2.bf16.msra.mxu0 %v1698_v20 }
  0x65   : > { %909 = vmatprep.subr.bf16.mxu0 %v1702_v21 }
  0x68   : > { %910 = vmatpush2.bf16.msra.mxu0 %v1704_v23 }
  0x69   : > { %911 = vmatprep.subr.bf16.mxu0 %v1708_v24 }
  0x6a   : > { %1595 = vmatmul.mubr.msk.bf16.gmra.mxu1 %vm862_vm0, %v1738_v32 }
  0x6b   : > { %1072 = vmatprep.mubr.bf16.mxu1 %v1910_v50 }
  0x6c   : > { %912 = vmatpush2.bf16.msra.mxu0 %v1710_v25 }
  0x6d   : > { %913 = vmatprep.subr.bf16.mxu0 %v1714_v26 }
  0x70   : > { %914 = vmatpush2.bf16.msra.mxu0 %v1716_v28 }
  0x71   : > { %915 = vmatprep.subr.bf16.mxu0 %v1720_v29 }
  0x72   : > { %1596 = vmatmul.mubr.msk.bf16.gmra.mxu1 %vm862_vm0, %v1742_v36 }
  0x73   : > { %1082 = vmatprep.mubr.bf16.mxu1 %v1910_v50 }
  0x74   : > { %916 = vmatpush2.bf16.msra.mxu0 %v1722_v30 }
  0x75   : > { %917 = vmatprep.subr.bf16.mxu0 %v1724_v31 }
  0x78   : > { %918 = vmatpush2.bf16.msra.mxu0 %v1726_v33 }
  0x7a   : > { %1597 = vmatmul.mubr.msk.bf16.gmra.mxu1 %vm862_vm0, %v1746_v39 }
  0x7b   : > { %920 = vmatmul.mubr.bf16.vlgmr.msra.gmra.mxu0 %v1727_v34  ;;  %1092 = vmatprep.mubr.bf16.mxu1 %v1910_v50 }
  0x7c   : > { %929 = vmatprep.mubr.bf16.mxu0 %v1731_v35 }
  0x82   : > { %1598 = vmatmul.mubr.msk.bf16.gmra.mxu1 %vm862_vm0, %v1750_v42 }
  0x83   : > { %930 = vmatmul.mubr.bf16.gmra.mxu0 %v1733_v37  ;;  %1102 = vmatprep.mubr.bf16.mxu1 %v1910_v50  ;;  %v1753_v50 = vld [vmem:[%s2348_s1 + $0x90] ss:$12 sps:$4 sm:$0xff]  }
  0x84   : > { %939 = vmatprep.mubr.bf16.mxu0 %v1735_v38 }
  0x8a   : > { %1599 = vmatmul.mubr.msk.bf16.gmra.mxu1 %vm862_vm0, %v1754_v45 }
  0x8b   : > { %940 = vmatmul.mubr.bf16.gmra.mxu0 %v1737_v40 }
  0x8c   : > { %949 = vmatprep.mubr.bf16.mxu0 %v1739_v41 }
  0x93   : > { %950 = vmatmul.mubr.bf16.gmra.mxu0 %v1741_v43 }
  0x94   : > { %959 = vmatprep.mubr.bf16.mxu0 %v1743_v44 }
  0x9b   : > { %960 = vmatmul.mubr.bf16.gmra.mxu0 %v1745_v46 }
  0x9c   : > { %969 = vmatprep.mubr.bf16.mxu0 %v1747_v47 }
  0xa3   : > { %970 = vmatmul.mubr.bf16.gmra.mxu0 %v1749_v48 }
  0xa4   : > { %979 = vmatprep.mubr.bf16.mxu0 %v1751_v49 }
  0xab   : > { %980 = vmatmul.mubr.bf16.gmra.mxu0 %v1753_v50 }
  0xac   : > { %989 = vmatprep.mubr.bf16.mxu0 %v1755_v51 }
  0xb3   : > { %990 = vmatmul.mubr.bf16.gmra.mxu0 %v1757_v52 }
 0x112   : > { %v1034_v53 = vpop.f32.mrf.mxu1 }
 0x114   : > { %v1036_v54 = vpop.f32.mrf.mxu1 }
 0x116   : > { %v1038_v55 = vpop.f32.mrf.mxu1 }
 0x118   : > { %v1040_v56 = vpop.f32.mrf.mxu1 }
 0x11a   : > { %v1044_v57 = vpop.f32.mrf.mxu1 }
 0x11c   : > { %v1046_v58 = vpop.f32.mrf.mxu1 }
 0x11e   : > { %v1048_v59 = vpop.f32.mrf.mxu1 }
 0x120   : > { %v1050_v60 = vpop.f32.mrf.mxu1 }
 0x122   : > { %v1054_v61 = vpop.f32.mrf.mxu1 }
 0x124   : > { %v1056_v62 = vpop.f32.mrf.mxu1 }
 0x126   : > { %v1058_v63 = vpop.f32.mrf.mxu1 }
 0x128   : > { %v1060_v0 = vpop.f32.mrf.mxu1 }
 0x12a   : > { %v1064_v1 = vpop.f32.mrf.mxu1 }
 0x12c   : > { %v2215_v2 = vpop.f32.mrf.mxu1 }
 0x12e   : > { %v2217_v3 = vpop.f32.mrf.mxu1 }
 0x130   : > { %v2219_v5 = vpop.f32.mrf.mxu1 }
 0x132   : > { %v2221_v7 = vpop.f32.mrf.mxu1 }
 0x134   : > { %v2223_v12 = vpop.f32.mrf.mxu1 }
 0x136   : > { %v2225_v20 = vpop.f32.mrf.mxu1 }
 0x138   : > { %v2227_v28 = vpop.f32.mrf.mxu1 }
 0x13a   : > { %v2229_v35 = vpop.f32.mrf.mxu1 }
 0x13b   : > { %v921_v4 = vpop.f32.mrf.mxu0 }
 0x13c   : > { %v1035_v9 = vadd.f32 %v1034_v53, %v921_v4  ;;  %v2231_v42 = vpop.f32.mrf.mxu1 }
 0x13d   : > { %v923_v6 = vpop.f32.mrf.mxu0 }
 0x13e   : > { %v1037_v11 = vadd.f32 %v1036_v54, %v923_v6  ;;  %v1600_v15 = vmul.f32 -1.442695, %v1035_v9  ;;  %v2233_v50 = vpop.f32.mrf.mxu1 }
 0x13f   : > { %v925_v8 = vpop.f32.mrf.mxu0 }
 0x140   : > { %v1039_v13 = vadd.f32 %v1038_v55, %v925_v8  ;;  %v1601_v18 = vmul.f32 -1.442695, %v1037_v11  ;;  %1758 = vpow2.f32 %v1600_v15 }
 0x141   : > { %v927_v10 = vpop.f32.mrf.mxu0 }
 0x142   : > { %v1041_v16 = vadd.f32 %v1040_v56, %v927_v10  ;;  %v1602_v21 = vmul.f32 -1.442695, %v1039_v13  ;;  %1760 = vpow2.f32 %v1601_v18 }
 0x143   : > { %v931_v14 = vpop.f32.mrf.mxu0 }
 0x144   : > { %v1045_v19 = vadd.f32 %v1044_v57, %v931_v14  ;;  %v1603_v24 = vmul.f32 -1.442695, %v1041_v16  ;;  %1762 = vpow2.f32 %v1602_v21 }
 0x145   : > { %v933_v17 = vpop.f32.mrf.mxu0 }
 0x146   : > { %v1047_v22 = vadd.f32 %v1046_v58, %v933_v17  ;;  %v1604_v27 = vmul.f32 -1.442695, %v1045_v19  ;;  %1764 = vpow2.f32 %v1603_v24 }
 0x147   : > { %v935_v23 = vpop.f32.mrf.mxu0 }
 0x148   : > { %v1049_v25 = vadd.f32 %v1048_v59, %v935_v23  ;;  %v1605_v29 = vmul.f32 -1.442695, %v1047_v22  ;;  %1766 = vpow2.f32 %v1604_v27 }
 0x149   : > { %v937_v26 = vpop.f32.mrf.mxu0 }
 0x14a   : > { %v1606_v32 = vmul.f32 -1.442695, %v1049_v25  ;;  %1768 = vpow2.f32 %v1605_v29  ;;  %v1051_v43 = vadd.f32 %v1050_v60, %v937_v26 }
 0x14b   : > { %v941_v30 = vpop.f32.mrf.mxu0 }
 0x14c   : > { %v1055_v31 = vadd.f32 %v1054_v61, %v941_v30  ;;  %1770 = vpow2.f32 %v1606_v32  ;;  %v1607_v52 = vmul.f32 -1.442695, %v1051_v43  ;;  %v2236_v61 = vpop.f32.mrf.mxu1 }
 0x14d   : > { %v943_v33 = vpop.f32.mrf.mxu0  ;;  %v1759_v48 = vpop.eup %1758 }
 0x14e   : > { %v1057_v34 = vadd.f32 %v1056_v62, %v943_v33  ;;  %v1608_v37 = vmul.f32 -1.442695, %v1055_v31  ;;  %v1137_v57 = vadd.f32 1.0, %v1759_v48  ;;  %v1094_v13 = vpop.f32.mrf.mxu1 }
 0x14f   : > { %v945_v36 = vpop.f32.mrf.mxu0  ;;  %v1761_v51 = vpop.eup %1760 }
 0x150   : > { %v1059_v38 = vadd.f32 %v1058_v63, %v945_v36  ;;  %v1609_v40 = vmul.f32 -1.442695, %v1057_v34  ;;  %1772 = vpow2.f32 %v1608_v37  ;;  %v1138_v60 = vadd.f32 1.0, %v1761_v51  ;;  %v1096_v23 = vpop.f32.mrf.mxu1 }
 0x151   : > { %v947_v39 = vpop.f32.mrf.mxu0  ;;  %v1763_v54 = vpop.eup %1762 }
 0x152   : > { %v1061_v41 = vadd.f32 %v1060_v0, %v947_v39  ;;  %v1610_v45 = vmul.f32 -1.442695, %v1059_v38  ;;  %1774 = vpow2.f32 %v1609_v40  ;;  %v1139_v63 = vadd.f32 1.0, %v1763_v54 }
 0x153   : > { %v951_v44 = vpop.f32.mrf.mxu0  ;;  %v1765_v59 = vpop.eup %1764 }
 0x154   : > { %v1065_v46 = vadd.f32 %v1064_v1, %v951_v44  ;;  %v1611_v49 = vmul.f32 -1.442695, %v1061_v41  ;;  %1776 = vpow2.f32 %v1610_v45  ;;  %v1140_v8 = vadd.f32 1.0, %v1765_v59 }
 0x155   : > { %v953_v47 = vpop.f32.mrf.mxu0  ;;  %v1767_v62 = vpop.eup %1766 }
 0x156   : > { %v1612_v55 = vmul.f32 -1.442695, %v1065_v46  ;;  %v1067_v56 = vadd.f32 %v2215_v2, %v953_v47  ;;  %1778 = vpow2.f32 %v1611_v49  ;;  %v1141_v10 = vadd.f32 1.0, %v1767_v62 }
 0x157   : > { %v955_v53 = vpop.f32.mrf.mxu0  ;;  %1780 = vpow2.f32 %v1607_v52  ;;  %v1769_v1 = vpop.eup %1768 }
 0x158   : > { %1782 = vpow2.f32 %v1612_v55  ;;  %v1613_v4 = vmul.f32 -1.442695, %v1067_v56  ;;  %v1069_v6 = vadd.f32 %v2217_v3, %v955_v53  ;;  %v1142_v14 = vadd.f32 1.0, %v1769_v1 }
 0x159   : > { %v957_v58 = vpop.f32.mrf.mxu0  ;;  %1784 = vrcp.f32 %v1137_v57  ;;  %v1771_v2 = vpop.eup %1770 }
 0x15a   : > { %1786 = vrcp.f32 %v1138_v60  ;;  %v1071_v11 = vadd.f32 %v2219_v5, %v957_v58  ;;  %v1614_v17 = vmul.f32 -1.442695, %v1069_v6  ;;  %v1143_v19 = vadd.f32 1.0, %v1771_v2 }
 0x15b   : > { %v961_v0 = vpop.f32.mrf.mxu0  ;;  %1788 = vrcp.f32 %v1139_v63 }
 0x15c   : > { %v1075_v15 = vadd.f32 %v2221_v7, %v961_v0  ;;  %1790 = vpow2.f32 %v1613_v4  ;;  %v1615_v22 = vmul.f32 -1.442695, %v1071_v11 }
 0x15d   : > { %v963_v9 = vpop.f32.mrf.mxu0  ;;  %v1773_v18 = vpop.eup %1772  ;;  %1792 = vrcp.f32 %v1140_v8 }
 0x15e   : > { %v1077_v3 = vadd.f32 %v2223_v12, %v963_v9  ;;  %1794 = vrcp.f32 %v1141_v10  ;;  %v1616_v5 = vmul.f32 -1.442695, %v1075_v15  ;;  %v1185_v27 = vadd.f32 1.0, %v1773_v18  ;;  %v1098_v12 = vpop.f32.mrf.mxu1 }
 0x15f   : > { %v965_v16 = vpop.f32.mrf.mxu0  ;;  %v1775_v24 = vpop.eup %1774  ;;  %1796 = vrcp.f32 %v1142_v14 }
 0x160   : > { %v1079_v25 = vadd.f32 %v2225_v20, %v965_v16  ;;  %1798 = vpow2.f32 %v1614_v17  ;;  %v1617_v29 = vmul.f32 -1.442695, %v1077_v3  ;;  %v1186_v32 = vadd.f32 1.0, %v1775_v24  ;;  %v1100_v45 = vpop.f32.mrf.mxu1 }
 0x161   : > { %v967_v21 = vpop.f32.mrf.mxu0  ;;  %v1777_v7 = vpop.eup %1776  ;;  %1800 = vrcp.f32 %v1143_v19 }
 0x162   : > { %v1081_v30 = vadd.f32 %v2227_v28, %v967_v21  ;;  %1802 = vpow2.f32 %v1615_v22  ;;  %v1618_v34 = vmul.f32 -1.442695, %v1079_v25  ;;  %v1187_v20 = vadd.f32 1.0, %v1777_v7  ;;  %v1104_v56 = vpop.f32.mrf.mxu1 }
 0x163   : > { %v971_v26 = vpop.f32.mrf.mxu0  ;;  %v1779_v33 = vpop.eup %1778  ;;  %1804 = vpow2.f32 %v1616_v5 }
 0x164   : > { %v1085_v36 = vadd.f32 %v2229_v35, %v971_v26  ;;  %v2245_v38 = vpop.eup %1780  ;;  %1806 = vrcp.f32 %v1185_v27  ;;  %v1619_v40 = vmul.f32 -1.442695, %v1081_v30  ;;  %v1188_v28 = vadd.f32 1.0, %v1779_v33  ;;  %v1106_v8 = vpop.f32.mrf.mxu1 }
 0x165   : > { %v973_v31 = vpop.f32.mrf.mxu0  ;;  %v1783_v39 = vpop.eup %1782  ;;  %1808 = vpow2.f32 %v1617_v29  ;;  %v1144_v27 = vadd.f32 1.0, %v2245_v38 }
 0x166   : > { %v2247_v43 = vpop.eup %1784  ;;  %1810 = vrcp.f32 %v1186_v32  ;;  %v1087_v44 = vadd.f32 %v2231_v42, %v973_v31  ;;  %v1620_v35 = vmul.f32 -1.442695, %v1085_v36  ;;  %v1189_v49 = vadd.f32 1.0, %v1783_v39  ;;  %v1265_v32 = vld [vmem:[%s2270_s15] sm:$0xff]  ;;  %v1266_v36 = vld [vmem:[%s2270_s15 + $0x8] sm:$0xff] }
 0x167   : > { %v975_v37 = vpop.f32.mrf.mxu0  ;;  %v2250_v46 = vpop.eup %1786  ;;  %1812 = vpow2.f32 %v1618_v34 }
 0x168   : > { %v2252_v48 = vpop.eup %1788  ;;  %1814 = vrcp.f32 %v1187_v20  ;;  %v1621_v55 = vmul.f32 -1.442695, %v1087_v44  ;;  %v1089_v42 = vadd.f32 %v2233_v50, %v975_v37 }
 0x169   : > { %v977_v41 = vpop.f32.mrf.mxu0  ;;  %v1791_v51 = vpop.eup %1790  ;;  %1816 = vpow2.f32 %v1619_v40 }
 0x16a   : > { %v2254_v54 = vpop.eup %1792  ;;  %1818 = vrcp.f32 %v1188_v28  ;;  %v1190_v62 = vadd.f32 1.0, %v1791_v51  ;;  %v1622_v6 = vmul.f32 -1.442695, %v1089_v42  ;;  %v1091_v50 = vadd.f32 %v2236_v61, %v977_v41  ;;  %v1108_v61 = vpop.f32.mrf.mxu1  ;;  %v1267_v41 = vld [vmem:[%s2270_s15 + $0x10] sm:$0xff]  ;;  %v1268_v51 = vld [vmem:[%s2270_s15 + $0x18] sm:$0xff] }
 0x16b   : > { %v981_v47 = vpop.f32.mrf.mxu0  ;;  %v2257_v57 = vpop.eup %1794  ;;  %1820 = vpow2.f32 %v1620_v35 }
 0x16c   : > { %v1095_v52 = vadd.f32 %v1094_v13, %v981_v47  ;;  %v2259_v60 = vpop.eup %1796  ;;  %1822 = vrcp.f32 %v1189_v49  ;;  %v1623_v18 = vmul.f32 -1.442695, %v1091_v50  ;;  %v1110_v7 = vpop.f32.mrf.mxu1 }
 0x16d   : > { %v983_v53 = vpop.f32.mrf.mxu0  ;;  %v1799_v63 = vpop.eup %1798 }
 0x16e   : > { %v1097_v58 = vadd.f32 %v1096_v23, %v983_v53  ;;  %1824 = vtanh.f32 %v1095_v52  ;;  %v2261_v4 = vpop.eup %1800  ;;  %v1191_v13 = vadd.f32 1.0, %v1799_v63 }
 0x16f   : > { %v985_v59 = vpop.f32.mrf.mxu0  ;;  %1826 = vpow2.f32 %v1621_v55  ;;  %v1803_v9 = vpop.eup %1802 }
 0x170   : > { %v1099_v0 = vadd.f32 %v1098_v12, %v985_v59  ;;  %1828 = vtanh.f32 %v1097_v58  ;;  %v1805_v11 = vpop.eup %1804  ;;  %v1192_v23 = vadd.f32 1.0, %v1803_v9 }
 0x171   : > { %v987_v1 = vpop.f32.mrf.mxu0  ;;  %1830 = vrcp.f32 %v1190_v62  ;;  %v1807_v14 = vpop.eup %1806  ;;  %v1233_v34 = vadd.f32 1.0, %v1805_v11  ;;  %v1271_v11 = vld [vmem:[%s2270_s15 + $0x30] sm:$0xff] }
 0x172   : > { %v1101_v2 = vadd.f32 %v1100_v45, %v987_v1  ;;  %1832 = vtanh.f32 %v1099_v0  ;;  %v1809_v17 = vpop.eup %1808  ;;  %v1273_v38 = vmul.f32 %v1807_v14, %v1265_v32 }
 0x173   : > { %v991_v10 = vpop.f32.mrf.mxu0  ;;  %1834 = vpow2.f32 %v1622_v6  ;;  %v1811_v19 = vpop.eup %1810  ;;  %v1234_v40 = vadd.f32 1.0, %v1809_v17  ;;  %v1270_v6 = vld [vmem:[%s2270_s15 + $0x28] sm:$0xff] }
 0x174   : > { %v1105_v15 = vadd.f32 %v1104_v56, %v991_v10  ;;  %1836 = vtanh.f32 %v1101_v2  ;;  %v1813_v22 = vpop.eup %1812  ;;  %v1274_v45 = vmul.f32 %v1811_v19, %v1266_v36  ;;  %v1269_v56 = vld [vmem:[%s2270_s15 + $0x20] sm:$0xff] }
 0x175   : > { %v993_v16 = vpop.f32.mrf.mxu0  ;;  %1838 = vrcp.f32 %v1191_v13  ;;  %v1815_v24 = vpop.eup %1814  ;;  %v1235_v49 = vadd.f32 1.0, %v1813_v22 }
 0x176   : > { %v1107_v3 = vadd.f32 %v1106_v8, %v993_v16  ;;  %1840 = vtanh.f32 %v1105_v15  ;;  %v1817_v26 = vpop.eup %1816  ;;  %v1275_v53 = vmul.f32 %v1815_v24, %v1267_v41 }
 0x177   : > { %v995_v21 = vpop.f32.mrf.mxu0  ;;  %1842 = vpow2.f32 %v1623_v18  ;;  %v1819_v29 = vpop.eup %1818  ;;  %v1272_v18 = vld [vmem:[%s2270_s15 + $0x38] sm:$0xff] }
 0x178   : > { %v1109_v5 = vadd.f32 %v1108_v61, %v995_v21  ;;  %1844 = vtanh.f32 %v1107_v3  ;;  %v1821_v31 = vpop.eup %1820  ;;  %v1276_v62 = vmul.f32 %v1819_v29, %v1268_v51 }
 0x179   : > { %v997_v25 = vpop.f32.mrf.mxu0  ;;  %1846 = vrcp.f32 %v1192_v23  ;;  %v1823_v12 = vpop.eup %1822  ;;  %v1237_v1 = vadd.f32 1.0, %v1821_v31 }
 0x17a   : > { %v1111_v30 = vadd.f32 %v1110_v7, %v997_v25  ;;  %1848 = vtanh.f32 %v1109_v5  ;;  %v1277_v8 = vmul.f32 %v1823_v12, %v1269_v56 }
 0x17b   : > { %v1825_v33 = vpop.eup %1824  ;;  %1850 = vrcp.f32 %v1144_v27 }
 0x17c   : > { %v1827_v37 = vpop.eup %1826  ;;  %v1281_v20 = vmul.f32 %v1825_v33, %v2247_v43  ;;  %1852 = vtanh.f32 %v1111_v30 }
 0x17d   : > { %v1829_v39 = vpop.eup %1828  ;;  %1854 = vrcp.f32 %v1233_v34  ;;  %v1238_v10 = vadd.f32 1.0, %v1827_v37 }
 0x17e   : > { %v1831_v28 = vpop.eup %1830  ;;  %v1289_v44 = vadd.f32 %v1281_v20, %v1273_v38  ;;  %v1282_v35 = vmul.f32 %v1829_v39, %v2250_v46  ;;  %v1236_v46 = vadd.f32 1.0, %v1817_v26 }
 0x17f   : > { %v1833_v47 = vpop.eup %1832  ;;  %v1278_v14 = vmul.f32 %v1831_v28, %v1270_v6 }
 0x180   : > { %v1835_v52 = vpop.eup %1834  ;;  %1856 = vtanh.f32 %v1289_v44  ;;  %1321 = vst [vmem:[%s2279_s13] sm:$0xff] %v1289_v44  ;;  %v1290_v43 = vadd.f32 %v1282_v35, %v1274_v45  ;;  %v1283_v55 = vmul.f32 %v1833_v47, %v2252_v48 }
 0x181   : > { %v1837_v42 = vpop.eup %1836  ;;  %1858 = vrcp.f32 %v1234_v40  ;;  %v1239_v17 = vadd.f32 1.0, %v1835_v52 }
 0x182   : > { %v1839_v58 = vpop.eup %1838  ;;  %1860 = vtanh.f32 %v1290_v43  ;;  %1322 = vst [vmem:[%s2279_s13 + $0x8] sm:$0xff] %v1290_v43  ;;  %v1291_v59 = vadd.f32 %v1283_v55, %v1275_v53  ;;  %v1284_v63 = vmul.f32 %v1837_v42, %v2254_v54 }
 0x183   : > { %v1841_v0 = vpop.eup %1840  ;;  %1862 = vrcp.f32 %v1235_v49  ;;  %v1279_v19 = vmul.f32 %v1839_v58, %v1271_v11 }
 0x184   : > { %v1843_v50 = vpop.eup %1842  ;;  %1864 = vtanh.f32 %v1291_v59  ;;  %1323 = vst [vmem:[%s2279_s13 + $0x10] sm:$0xff] %v1291_v59  ;;  %v1292_v48 = vadd.f32 %v1284_v63, %v1276_v62  ;;  %v1285_v9 = vmul.f32 %v1841_v0, %v2257_v57 }
 0x185   : > { %v1845_v2 = vpop.eup %1844  ;;  %1866 = vrcp.f32 %v1236_v46  ;;  %v1240_v22 = vadd.f32 1.0, %v1843_v50 }
 0x186   : > { %v1847_v13 = vpop.eup %1846  ;;  %1868 = vtanh.f32 %v1292_v48  ;;  %1324 = vst [vmem:[%s2279_s13 + $0x18] sm:$0xff] %v1292_v48  ;;  %v1293_v54 = vadd.f32 %v1285_v9, %v1277_v8  ;;  %v1286_v15 = vmul.f32 %v1845_v2, %v2259_v60 }
 0x187   : > { %v1849_v16 = vpop.eup %1848  ;;  %1870 = vrcp.f32 %v1237_v1  ;;  %v1280_v60 = vmul.f32 %v1847_v13, %v1272_v18 }
 0x188   : > { %v1851_v61 = vpop.eup %1850  ;;  %1872 = vtanh.f32 %v1293_v54  ;;  %1325 = vst [vmem:[%s2279_s13 + $0x20] sm:$0xff] %v1293_v54  ;;  %v1294_v57 = vadd.f32 %v1286_v15, %v1278_v14  ;;  %v1287_v3 = vmul.f32 %v1849_v16, %v2261_v4 }
 0x189   : > { %v1853_v21 = vpop.eup %1852  ;;  %1874 = vrcp.f32 %v1238_v10 }
 0x18a   : > { %1876 = vtanh.f32 %v1294_v57  ;;  %1326 = vst [vmem:[%s2279_s13 + $0x28] sm:$0xff] %v1294_v57  ;;  %v1295_v23 = vadd.f32 %v1287_v3, %v1279_v19  ;;  %v1288_v24 = vmul.f32 %v1853_v21, %v1851_v61  ;;  %v1855_v5 = vpop.eup %1854 }
 0x18b   : > { %1878 = vrcp.f32 %v1239_v17 }
 0x18c   : > { %1880 = vtanh.f32 %v1295_v23  ;;  %1327 = vst [vmem:[%s2279_s13 + $0x30] sm:$0xff] %v1295_v23  ;;  %v1296_v25 = vadd.f32 %v1288_v24, %v1280_v60 }
 0x18d   : > { %v1857_v26 = vpop.eup %1856  ;;  %1882 = vrcp.f32 %v1240_v22 }
 0x18e   : > { %v1859_v27 = vpop.eup %1858  ;;  %v1305_v7 = vmul.f32 %v1857_v26, %v1855_v5  ;;  %1884 = vtanh.f32 %v1296_v25  ;;  %1328 = vst [vmem:[%s2279_s13 + $0x38] sm:$0xff] %v1296_v25 }
 0x18f   : > { %v1861_v4 = vpop.eup %1860 }
 0x190   : > { %v1863_v29 = vpop.eup %1862  ;;  %1313 = vst [vmem:[%s2299_s7] sm:$0xff] %v1305_v7  ;;  %v1306_v30 = vmul.f32 %v1861_v4, %v1859_v27 }
 0x191   : > { %v1865_v31 = vpop.eup %1864 }
 0x192   : > { %v1867_v32 = vpop.eup %1866  ;;  %1314 = vst [vmem:[%s2299_s7 + $0x8] sm:$0xff] %v1306_v30  ;;  %v1307_v12 = vmul.f32 %v1865_v31, %v1863_v29 }
 0x193   : > { %v1869_v33 = vpop.eup %1868 }
 0x194   : > { %v1871_v34 = vpop.eup %1870  ;;  %1315 = vst [vmem:[%s2299_s7 + $0x10] sm:$0xff] %v1307_v12  ;;  %v1308_v36 = vmul.f32 %v1869_v33, %v1867_v32 }
 0x195   : > { %v1873_v37 = vpop.eup %1872 }
 0x196   : > { %v1875_v38 = vpop.eup %1874  ;;  %1316 = vst [vmem:[%s2299_s7 + $0x18] sm:$0xff] %v1308_v36  ;;  %v1309_v20 = vmul.f32 %v1873_v37, %v1871_v34 }
 0x197   : > { %v1877_v39 = vpop.eup %1876  ;;  %v1355_v49 = vld [vmem:[%s2299_s7] sm:$0xff] (%p1971_p5) }
 0x198   : > { %v1879_v40 = vpop.eup %1878  ;;  %1317 = vst [vmem:[%s2299_s7 + $0x20] sm:$0xff] %v1309_v20  ;;  %v1310_v41 = vmul.f32 %v1877_v39, %v1875_v38  ;;  %1356 = vst [vmem:[%s1342_s11] sm:$0xff] (%p1971_p5), %v1355_v49 }
 0x199   : > { %v1881_v28 = vpop.eup %1880  ;;  %v1357_v51 = vld [vmem:[%s2299_s7 + $0x8] sm:$0xff] (%p1971_p5) }
 0x19a   : > { %v1883_v44 = vpop.eup %1882  ;;  %1318 = vst [vmem:[%s2299_s7 + $0x28] sm:$0xff] %v1310_v41  ;;  %v1311_v45 = vmul.f32 %v1881_v28, %v1879_v40  ;;  %1339 = sbr.rel (!%p1971_p5) target bundleno = 423 (0x1a7), region = 97  ;;  %1358 = vst [vmem:[%s1342_s11 + $0x8] sm:$0xff] (%p1971_p5), %v1357_v51 }
 0x19b   : > { %v1885_v35 = vpop.eup %1884  ;;  %v1359_v52 = vld [vmem:[%s2299_s7 + $0x10] sm:$0xff] (%p1971_p5) }
 0x19c   : > { %1319 = vst [vmem:[%s2299_s7 + $0x30] sm:$0xff] %v1311_v45  ;;  %v1312_v47 = vmul.f32 %v1885_v35, %v1883_v44  ;;  %1360 = vst [vmem:[%s1342_s11 + $0x20] sm:$0xff] (%p1971_p5), %v1359_v52 }
 0x19d   : > { %v1361_v43 = vld [vmem:[%s2299_s7 + $0x18] sm:$0xff] (%p1971_p5) }
 0x19e   : > { %1320 = vst [vmem:[%s2299_s7 + $0x38] sm:$0xff] %v1312_v47  ;;  %1362 = vst [vmem:[%s1342_s11 + $0x28] sm:$0xff] (%p1971_p5), %v1361_v43 }
 0x19f   : > { %v1363_v53 = vld [vmem:[%s2299_s7 + $0x20] sm:$0xff] }
 0x1a0   : > { %1364 = vst [vmem:[%s1342_s11 + $0x40] sm:$0xff] %v1363_v53 }
 0x1a1   : > { %v1365_v55 = vld [vmem:[%s2299_s7 + $0x28] sm:$0xff] }
 0x1a2   : > { %1366 = vst [vmem:[%s1342_s11 + $0x48] sm:$0xff] %v1365_v55 }
 0x1a3   : > { %v1367_v42 = vld [vmem:[%s2299_s7 + $0x30] sm:$0xff] }
 0x1a4   : > { %1368 = vst [vmem:[%s1342_s11 + $0x60] sm:$0xff] %v1367_v42 }
 0x1a5   : > { %v1369_v46 = vld [vmem:[%s2299_s7 + $0x38] sm:$0xff] }
 0x1a6   : > { %1370 = vst [vmem:[%s1342_s11 + $0x68] sm:$0xff] %v1369_v46 }
 0x1a7 PF: > { %1376 = sbr.rel (!%p1971_p5) target bundleno = 429 (0x1ad), region = 120  ;;  %s1635_s12 = sshll.u32 (%p1971_p5), %s1952_s18, 4  ;;  %v1392_v56 = vld [vmem:[%s2279_s13] sm:$0xff] (%p1971_p5)  ;;  %v1394_v58 = vld [vmem:[%s2279_s13 + $0x8] sm:$0xff] (%p1971_p5)  ;;  %v1396_v59 = vld [vmem:[%s2279_s13 + $0x10] sm:$0xff] (%p1971_p5) }
 0x1a8   : > { %s1379_s21 = scalar_lea.vmem (%p1971_p5), %s2351_s4, %s1635_s12  ;;  %v1398_v62 = vld [vmem:[%s2279_s13 + $0x18] sm:$0xff] (%p1971_p5)  ;;  %v1400_v63 = vld [vmem:[%s2279_s13 + $0x20] sm:$0xff] (%p1971_p5)  ;;  %v1402_v0 = vld [vmem:[%s2279_s13 + $0x28] sm:$0xff] (%p1971_p5) }
 0x1a9   : > { %1393 = vst [vmem:[%s1379_s21] sm:$0xff] (%p1971_p5), %v1392_v56  ;;  %1395 = vst [vmem:[%s1379_s21 + $0x8] sm:$0xff] (%p1971_p5), %v1394_v58  ;;  %v1404_v1 = vld [vmem:[%s2279_s13 + $0x30] sm:$0xff] (%p1971_p5)  ;;  %v1406_v6 = vld [vmem:[%s2279_s13 + $0x38] sm:$0xff] (%p1971_p5) }
 0x1aa   : > { %1397 = vst [vmem:[%s1379_s21 + $0x20] sm:$0xff] (%p1971_p5), %v1396_v59  ;;  %1399 = vst [vmem:[%s1379_s21 + $0x28] sm:$0xff] (%p1971_p5), %v1398_v62 }
 0x1ab   : > { %1401 = vst [vmem:[%s1379_s21 + $0x40] sm:$0xff] (%p1971_p5), %v1400_v63  ;;  %1403 = vst [vmem:[%s1379_s21 + $0x48] sm:$0xff] (%p1971_p5), %v1402_v0 }
 0x1ac   : > { %1405 = vst [vmem:[%s1379_s21 + $0x60] sm:$0xff] %v1404_v1  ;;  %1407 = vst [vmem:[%s1379_s21 + $0x68] sm:$0xff] %v1406_v6 }
 0x1ad PF: > { %p12_p10 = scmp.ge.s32.totalorder %s1955_s19, 4   ;;  %s2354_s15 = smov %s1904_s16 }
 0x1ae   : > { %s2355_s16 = smov %s1965_s22  ;;  %s2356_s17 = smov %s1955_s19 }
 0x1af   :  { %14 = sbr.rel (!%p12_p10) target bundleno = 2 (0x2), region = 194 }

</bundles_post_ra>
